<compile_context>
chip_gen: v7x
topology: tpu7x:2x2x1
jax: 0.10.0
libtpu: 0.0.40
codegen_flags: <defaults>
</compile_context>

<pallas_src>
import functools

import jax
import jax.numpy as jnp
from jax.experimental import pallas as pl
from jax.experimental.pallas import tpu as pltpu


def _centering_kernel(*refs, momentum, shift, scale, batch):
    # Unpack refs according to the static shift/scale configuration.
    idx = 0
    x_ref = refs[idx]; idx += 1
    rm_ref = refs[idx]; idx += 1
    var_ref = refs[idx]; idx += 1
    bias_ref = None
    weight_ref = None
    if shift:
        bias_ref = refs[idx]; idx += 1
    if scale:
        weight_ref = refs[idx]; idx += 1
    out_ref, new_rm_ref, new_var_ref = refs[idx], refs[idx + 1], refs[idx + 2]

    x = x_ref[...].astype(jnp.float32)                       # [N, TF]

    # Batch statistics (reduction over sublane axis 0) — fully inside the tile.
    mean = jnp.mean(x, axis=0, keepdims=True)                # [1, TF]
    diff = x - mean                                          # x minus the *batch* mean
    # torch.std(dim=0) is the unbiased (N-1) estimator.
    var_unbiased = jnp.sum(diff * diff, axis=0, keepdims=True) / jnp.float32(batch - 1)
    std = jnp.clip(jnp.sqrt(var_unbiased), 1e-5, 10.0)       # [1, TF]

    # Running-buffer EMA updates (same form as the PyTorch code).
    rm = rm_ref[...].astype(jnp.float32)
    rv = var_ref[...].astype(jnp.float32)
    new_rm_ref[...] = (rm + momentum * (mean - rm)).astype(new_rm_ref.dtype)
    new_var_ref[...] = (rv + momentum * (std - rv)).astype(new_var_ref.dtype)

    # Training-mode output path: center by the *batch* mean (not the buffer).
    out = diff
    if shift:
        out = out + bias_ref[...].astype(jnp.float32) * std
    if scale:
        out = out * weight_ref[...].astype(jnp.float32)
    out_ref[...] = out.astype(out_ref.dtype)


def _pick_feature_tile(n, f):
    """Largest multiple-of-128 lane tile whose working set fits a ~12 MiB budget."""
    if f % 128 != 0:
        # Fall back to a full-extent block (block_shape == array shape is always legal).
        return f
    budget = 12 * 1024 * 1024
    tf = 128
    for cand in (2048, 1024, 512, 256, 128):
        # ~5 f32 copies of the (N, TF) tile live simultaneously (see header comment).
        if 5 * n * cand * 4 <= budget:
            tf = cand
            break
    return min(tf, f)


def centering_forward(x, running_mean, var, bias=None, weight=None,
                      *, momentum=0.1, shift=False, scale=False):
    """Training-mode Centering forward. Returns (out, new_running_mean, new_var)."""
    n, f = x.shape
    assert n > 1, "unbiased std (torch.std default) requires batch > 1"
    if shift:
        assert bias is not None
    if scale:
        assert weight is not None

    rm2 = running_mean.reshape(1, f)
    var2 = var.reshape(1, f)

    tf = _pick_feature_tile(n, f)
    grid = (pl.cdiv(f, tf),)

    spec_xf = pl.BlockSpec((n, tf), lambda j: (0, j))
    spec_1f = pl.BlockSpec((1, tf), lambda j: (0, j))

    inputs = [x, rm2, var2]
    in_specs = [spec_xf, spec_1f, spec_1f]
    if shift:
        inputs.append(bias.reshape(1, f))
        in_specs.append(spec_1f)
    if scale:
        inputs.append(weight.reshape(1, f))
        in_specs.append(spec_1f)

    kernel = functools.partial(
        _centering_kernel, momentum=momentum, shift=shift, scale=scale, batch=n)

    itemsize = jnp.dtype(x.dtype).itemsize
    cost = pl.CostEstimate(
        flops=8 * n * f,
        transcendentals=f,                      # one sqrt per feature
        bytes_accessed=2 * n * f * itemsize     # read x + write out (dominant)
        + 8 * f * 4,                            # param/buffer traffic
    )

    out, new_rm, new_var = pl.pallas_call(
        kernel,
        grid=grid,
        in_specs=in_specs,
        out_specs=[spec_xf, spec_1f, spec_1f],
        out_shape=[
            jax.ShapeDtypeStruct((n, f), x.dtype),
            jax.ShapeDtypeStruct((1, f), running_mean.dtype),
            jax.ShapeDtypeStruct((1, f), var.dtype),
        ],
        compiler_params=pltpu.CompilerParams(
            dimension_semantics=("parallel",)),
        cost_estimate=cost,
    )(*inputs)

    return out, new_rm.reshape(f), new_var.reshape(f)


# TODO(synk): eval-mode branch (use buffers instead of batch stats) not implemented;
# this mirrors the previous training-mode forward only.


if __name__ == "__main__":
    key = jax.random.PRNGKey(0)

    N, F = 8, 256                         # batch, num_features (F multiple of 128)
    x = jax.random.normal(key, (N, F), dtype=jnp.float32)

    # Deterministic parameter/buffer init per Centering.__init__:
    running_mean = jnp.zeros((F,), jnp.float32)   # buffer 'running_mean'
    var = jnp.zeros((F,), jnp.float32)            # buffer 'var'
    bias = jnp.zeros((F,), jnp.float32)           # nn.Parameter (shift=True)
    weight = jnp.full((F,), 2.0, jnp.float32)     # nn.Parameter, init const 2 (scale=True)

    momentum = 0.1

    # Pure-JAX reference of the same math.
    mean_ref = x.mean(0)
    std_ref = jnp.clip(x.std(0, ddof=1), 1e-5, 10.0)
    rm_ref = running_mean + momentum * (mean_ref - running_mean)
    var_ref_new = var + momentum * (std_ref - var)

    # Config 1: shift=True, scale=True (full path).
    out, new_rm, new_var = centering_forward(
        x, running_mean, var, bias, weight,
        momentum=momentum, shift=True, scale=True)
    jax.block_until_ready((out, new_rm, new_var))
    out_expect = (x - mean_ref + bias * std_ref) * weight
    assert jnp.allclose(out, out_expect, atol=1e-5, rtol=1e-5)
    assert jnp.allclose(new_rm, rm_ref, atol=1e-6)
    assert jnp.allclose(new_var, var_ref_new, atol=1e-6)

    # Config 2: module defaults (shift=False, scale=False) — bias/weight DMAs dropped.
    out2, new_rm2, new_var2 = centering_forward(
        x, running_mean, var, momentum=momentum, shift=False, scale=False)
    jax.block_until_ready((out2, new_rm2, new_var2))
    assert jnp.allclose(out2, x - mean_ref, atol=1e-5, rtol=1e-5)
    assert jnp.allclose(new_rm2, rm_ref, atol=1e-6)
    assert jnp.allclose(new_var2, var_ref_new, atol=1e-6)

    print("KERNEL_OK")
</pallas_src>

<mosaic_0001>
module attributes {stable_mosaic.version = 11 : i64} {
  func.func @_centering_kernel(%arg0: i32, %arg1: memref<8x256xf32, #tpu.memory_space<vmem>>, %arg2: memref<1x256xf32, #tpu.memory_space<vmem>>, %arg3: memref<1x256xf32, #tpu.memory_space<vmem>>, %arg4: memref<1x256xf32, #tpu.memory_space<vmem>>, %arg5: memref<1x256xf32, #tpu.memory_space<vmem>>, %arg6: memref<8x256xf32, #tpu.memory_space<vmem>>, %arg7: memref<1x256xf32, #tpu.memory_space<vmem>>, %arg8: memref<1x256xf32, #tpu.memory_space<vmem>>) attributes {dimension_semantics = [#tpu.dimension_semantics<parallel>], iteration_bounds = array<i64: 1>, scalar_prefetch = 0 : i64, scratch_operands = 0 : i64, tpu.core_type = #tpu.core_type<tc>, window_params = [{transform_indices = @transform_0, window_bounds = array<i64: 8, 256>}, {transform_indices = @transform_1, window_bounds = array<i64: 1, 256>}, {transform_indices = @transform_2, window_bounds = array<i64: 1, 256>}, {transform_indices = @transform_3, window_bounds = array<i64: 1, 256>}, {transform_indices = @transform_4, window_bounds = array<i64: 1, 256>}, {transform_indices = @transform_5, window_bounds = array<i64: 8, 256>}, {transform_indices = @transform_6, window_bounds = array<i64: 1, 256>}, {transform_indices = @transform_7, window_bounds = array<i64: 1, 256>}]} {
    %c0 = arith.constant 0 : index
    %c0_0 = arith.constant 0 : index
    %0 = vector.load %arg1[%c0, %c0_0] : memref<8x256xf32, #tpu.memory_space<vmem>>, vector<8x256xf32>
    %cst = arith.constant dense<0.000000e+00> : vector<256xf32>
    %1 = vector.multi_reduction <add>, %0, %cst [0] : vector<8x256xf32> to vector<256xf32>
    %2 = vector.shape_cast %1 : vector<256xf32> to vector<1x256xf32>
    %cst_1 = arith.constant 8.000000e+00 : f32
    %3 = vector.broadcast %cst_1 : f32 to vector<1x256xf32>
    %4 = arith.divf %2, %3 : vector<1x256xf32>
    %5 = vector.broadcast %4 : vector<1x256xf32> to vector<8x256xf32>
    %6 = arith.subf %0, %5 : vector<8x256xf32>
    %7 = arith.mulf %6, %6 : vector<8x256xf32>
    %cst_2 = arith.constant dense<0.000000e+00> : vector<256xf32>
    %8 = vector.multi_reduction <add>, %7, %cst_2 [0] : vector<8x256xf32> to vector<256xf32>
    %9 = vector.shape_cast %8 : vector<256xf32> to vector<1x256xf32>
    %cst_3 = arith.constant 7.000000e+00 : f32
    %10 = vector.broadcast %cst_3 : f32 to vector<1x256xf32>
    %11 = arith.divf %9, %10 : vector<1x256xf32>
    %12 = math.sqrt %11 : vector<1x256xf32>
    %cst_4 = arith.constant 9.99999974E-6 : f32
    %cst_5 = arith.constant 1.000000e+01 : f32
    %13 = vector.broadcast %cst_4 : f32 to vector<1x256xf32>
    %14 = arith.maximumf %13, %12 : vector<1x256xf32>
    %15 = vector.broadcast %cst_5 : f32 to vector<1x256xf32>
    %16 = arith.minimumf %15, %14 : vector<1x256xf32>
    %c0_6 = arith.constant 0 : index
    %c0_7 = arith.constant 0 : index
    %17 = vector.load %arg2[%c0_6, %c0_7] : memref<1x256xf32, #tpu.memory_space<vmem>>, vector<1x256xf32>
    %c0_8 = arith.constant 0 : index
    %c0_9 = arith.constant 0 : index
    %18 = vector.load %arg3[%c0_8, %c0_9] : memref<1x256xf32, #tpu.memory_space<vmem>>, vector<1x256xf32>
    %19 = arith.subf %4, %17 : vector<1x256xf32>
    %cst_10 = arith.constant 1.000000e-01 : f32
    %20 = vector.broadcast %cst_10 : f32 to vector<1x256xf32>
    %21 = arith.mulf %20, %19 : vector<1x256xf32>
    %22 = arith.addf %17, %21 : vector<1x256xf32>
    %c0_11 = arith.constant 0 : index
    %c0_12 = arith.constant 0 : index
    %23 = vector.load %arg7[%c0_11, %c0_12] : memref<1x256xf32, #tpu.memory_space<vmem>>, vector<1x256xf32>
    tpu.vector_store %arg7[%c0_11, %c0_12], %22 {strides = array<i32>} : memref<1x256xf32, #tpu.memory_space<vmem>>, vector<1x256xf32>,
    %24 = arith.subf %16, %18 : vector<1x256xf32>
    %cst_13 = arith.constant 1.000000e-01 : f32
    %25 = vector.broadcast %cst_13 : f32 to vector<1x256xf32>
    %26 = arith.mulf %25, %24 : vector<1x256xf32>
    %27 = arith.addf %18, %26 : vector<1x256xf32>
    %c0_14 = arith.constant 0 : index
    %c0_15 = arith.constant 0 : index
    %28 = vector.load %arg8[%c0_14, %c0_15] : memref<1x256xf32, #tpu.memory_space<vmem>>, vector<1x256xf32>
    tpu.vector_store %arg8[%c0_14, %c0_15], %27 {strides = array<i32>} : memref<1x256xf32, #tpu.memory_space<vmem>>, vector<1x256xf32>,
    %c0_16 = arith.constant 0 : index
    %c0_17 = arith.constant 0 : index
    %29 = vector.load %arg4[%c0_16, %c0_17] : memref<1x256xf32, #tpu.memory_space<vmem>>, vector<1x256xf32>
    %30 = arith.mulf %29, %16 : vector<1x256xf32>
    %31 = vector.broadcast %30 : vector<1x256xf32> to vector<8x256xf32>
    %32 = arith.addf %6, %31 : vector<8x256xf32>
    %c0_18 = arith.constant 0 : index
    %c0_19 = arith.constant 0 : index
    %33 = vector.load %arg5[%c0_18, %c0_19] : memref<1x256xf32, #tpu.memory_space<vmem>>, vector<1x256xf32>
    %34 = vector.broadcast %33 : vector<1x256xf32> to vector<8x256xf32>
    %35 = arith.mulf %32, %34 : vector<8x256xf32>
    %c0_20 = arith.constant 0 : index
    %c0_21 = arith.constant 0 : index
    %36 = vector.load %arg6[%c0_20, %c0_21] : memref<8x256xf32, #tpu.memory_space<vmem>>, vector<8x256xf32>
    tpu.vector_store %arg6[%c0_20, %c0_21], %35 {strides = array<i32>} : memref<8x256xf32, #tpu.memory_space<vmem>>, vector<8x256xf32>,
    return
  }
  func.func @transform_0(%arg0: i32) -> (i32, i32) {
    %c0_i32 = arith.constant 0 : i32
    %c0_i32_0 = arith.constant 0 : i32
    return %c0_i32, %arg0 : i32, i32
  }
  func.func @transform_1(%arg0: i32) -> (i32, i32) {
    %c0_i32 = arith.constant 0 : i32
    %c0_i32_0 = arith.constant 0 : i32
    return %c0_i32, %arg0 : i32, i32
  }
  func.func @transform_2(%arg0: i32) -> (i32, i32) {
    %c0_i32 = arith.constant 0 : i32
    %c0_i32_0 = arith.constant 0 : i32
    return %c0_i32, %arg0 : i32, i32
  }
  func.func @transform_3(%arg0: i32) -> (i32, i32) {
    %c0_i32 = arith.constant 0 : i32
    %c0_i32_0 = arith.constant 0 : i32
    return %c0_i32, %arg0 : i32, i32
  }
  func.func @transform_4(%arg0: i32) -> (i32, i32) {
    %c0_i32 = arith.constant 0 : i32
    %c0_i32_0 = arith.constant 0 : i32
    return %c0_i32, %arg0 : i32, i32
  }
  func.func @transform_5(%arg0: i32) -> (i32, i32) {
    %c0_i32 = arith.constant 0 : i32
    %c0_i32_0 = arith.constant 0 : i32
    return %c0_i32, %arg0 : i32, i32
  }
  func.func @transform_6(%arg0: i32) -> (i32, i32) {
    %c0_i32 = arith.constant 0 : i32
    %c0_i32_0 = arith.constant 0 : i32
    return %c0_i32, %arg0 : i32, i32
  }
  func.func @transform_7(%arg0: i32) -> (i32, i32) {
    %c0_i32 = arith.constant 0 : i32
    %c0_i32_0 = arith.constant 0 : i32
    return %c0_i32, %arg0 : i32, i32
  }
}

</mosaic_0001>

<bundles_post_ra>
// kernel: tpu_custom_call.1
= control target key start
LH: loop header
LB: loop body
LE: loop exit
PB: predicated region body
PF: predicated region fallthrough
CT: control target
= control target key end

     0   :  { %13 = vsyncpa [#allocation3], 0  ;;  %s504_s0 = inlined_call_operand.hbm [shape: f32[8,256], index: 0, kind: input, shape index: {}]   ;;  %s505_s1 = inlined_call_operand.vmem [shape: f32[1,256], index: 1, kind: input, shape index: {}]   ;;  %s506_s2 = inlined_call_operand.vmem [shape: f32[1,256], index: 2, kind: input, shape index: {}]   ;;  %s507_s3 = inlined_call_operand.vmem [shape: f32[1,256], index: 3, kind: input, shape index: {}]   ;;  %s508_s4 = inlined_call_operand.vmem [shape: f32[1,256], index: 4, kind: input, shape index: {}]   ;;  %s509_s5 = inlined_call_operand.hbm [shape: f32[8,256], index: 5, kind: output, shape index: {0}]   ;;  %s510_s6 = inlined_call_operand.hbm [shape: f32[1,256], index: 6, kind: output, shape index: {1}]   ;;  %s511_s7 = inlined_call_operand.hbm [shape: f32[1,256], index: 7, kind: output, shape index: {2}]  }
   0x1   :  { %14 = vsyncpa [#allocation4], 0 }
   0x2   :  { %15 = vsyncpa [#allocation7], 0  ;;  %s361_s24 = smov [#allocation2]   ;;  %s267_s28 = scalar_lea.hbm %s504_s0, 256 }
   0x3   :  { %s22_s25 = sshll.u32 %s361_s24, 4  ;;  %p268_p0 = scmp.ne.s32.totalorder %s504_s0, %s267_s28  ;;  %s23_s25 = int_to_ptr.vmem [resolvable:$true] %s22_s25 }
   0x4   :  { %p271_p1 = scmp.lt.u32.totalorder %s267_s28, %s504_s0 }
   0x6   :  { %p273_p2 = pnand %p271_p1, %p268_p0 }
   0x8   :  { %276 = shalt.err (!%p273_p2)
}
   0x9   :  { %s277_s10 = scalar_lea.vmem %s23_s25, 256  ;;  %p282_p4 = scmp.lt.s32.totalorder %s23_s25, %s23_s25 }
   0xa   :  { %p278_p3 = scmp.ne.s32.totalorder %s23_s25, %s277_s10  ;;  %p283_p5 = scmp.lt.s32.totalorder %s277_s10, %s277_s10 }
   0xc   :  { %p284_p6 = por %p283_p5, %p282_p4 }
   0xe   :  { %p285_p7 = pnand %p284_p6, %p278_p3 }
  0x10   :  { %288 = shalt.err (!%p285_p7)
}
  0x11   :  { %25 = dma.hbm_to_vmem [thread:$0]  %s504_s0, 256, %s23_s25, [#allocation3]  }
  0x12   :  { %355 = dma.done.wait [#allocation3], 256  }
  0x13   :  { %356 = vsyncadd [#allocation3], 4294967040  ;;  %v94_v0 = vlaneseq  ;;  %v37_v1 = vld [vmem:[#allocation2] sm:$0xff]  ;;  %v38_v2 = vld [vmem:[#allocation2 + $0x8] sm:$0xff]  ;;  %v362_v17 = vmov 1966171168  }
  0x14   :  { %v39_v3 = vrot.slane %v37_v1, 4  ;;  %v45_v4 = vrot.slane %v38_v2, 4  ;;  %v91_v14 = vld [vmem:[%s505_s1] sm:$0x3]  ;;  %v112_v18 = vunpack.c.l.s4 %v362_v17  ;;  %s363_s1 = smov [#allocation6]  }
  0x15   :  { %v95_v7 = vshrl.u32 %v94_v0, 7  ;;  %s232_s14 = sshll.u32 %s363_s1, 4  ;;  %vm439_vm0 = vcmp.lt.s32.totalorder %v94_v0, 256  ;;  %s233_s14 = int_to_ptr.vmem [resolvable:$true] %s232_s14 }
  0x16   :  { %v40_v5 = vadd.f32 %v39_v3, %v37_v1  ;;  %v46_v6 = vadd.f32 %v45_v4, %v38_v2  ;;  %v113_v25 = vunpack.c.0.s8 %v112_v18  ;;  %s289_s15 = scalar_lea.vmem %s233_s14, 32  ;;  %p294_p9 = scmp.lt.s32.totalorder %s233_s14, %s233_s14 }
  0x17   :  { %v418_v12 = vsub.s32 0, %v95_v7  ;;  %v420_v13 = vsub.s32 1, %v95_v7  ;;  %p290_p8 = scmp.ne.s32.totalorder %s233_s14, %s289_s15  ;;  %p295_p10 = scmp.lt.s32.totalorder %s289_s15, %s289_s15 }
  0x18   :  { %v41_v8 = vrot.slane %v40_v5, 2  ;;  %v47_v9 = vrot.slane %v46_v6, 2  ;;  %v435_v37 = vsub.s32 %v113_v25, %v95_v7 }
  0x19   :  { %v97_v21 = vrot.slane %v91_v14, %v418_v12  ;;  %v101_v22 = vrot.slane %v91_v14, %v420_v13  ;;  %p296_p11 = por %p295_p10, %p294_p9 }
  0x1a   :  { %v42_v10 = vadd.f32 %v41_v8, %v40_v5  ;;  %v48_v11 = vadd.f32 %v47_v9, %v46_v6 }
  0x1b   :  { %p297_p12 = pnand %p296_p11, %p290_p8 }
  0x1c   :  { %v43_v15 = vrot.slane %v42_v10, 1  ;;  %v49_v16 = vrot.slane %v48_v11, 1 }
  0x1e   :  { %v44_v19 = vadd.f32 %v43_v15, %v42_v10  ;;  %v50_v20 = vadd.f32 %v49_v16, %v48_v11 }
  0x20   :  { %v52_v23 = vmul.f32 0.125, %v44_v19  ;;  %v53_v24 = vmul.f32 0.125, %v50_v20 }
  0x22   :  { %v427_v26 = vsub.f32 %v37_v1, %v52_v23  ;;  %v429_v27 = vsub.f32 %v38_v2, %v53_v24  ;;  %v104_v28 = vsub.f32 %v52_v23, %v97_v21  ;;  %v105_v29 = vsub.f32 %v53_v24, %v101_v22 }
  0x24   :  { %v56_v30 = vmul.f32 %v427_v26, %v427_v26  ;;  %v57_v31 = vmul.f32 %v429_v27, %v429_v27  ;;  %v106_v32 = vmul.f32 0.1, %v104_v28  ;;  %v107_v33 = vmul.f32 0.1, %v105_v29 }
  0x26   :  { %v58_v34 = vrot.slane %v56_v30, 4  ;;  %v64_v35 = vrot.slane %v57_v31, 4  ;;  %v110_v36 = vcombine.low %v106_v32, %v107_v33 }
  0x28   :  { %v59_v38 = vadd.f32 %v58_v34, %v56_v30  ;;  %v65_v39 = vadd.f32 %v64_v35, %v57_v31  ;;  %v117_v40 = vrot.slane %v110_v36, %v435_v37 }
  0x2a   :  { %v60_v41 = vrot.slane %v59_v38, 2  ;;  %v66_v42 = vrot.slane %v65_v39, 2  ;;  %v124_v43 = vrot.slane %v117_v40, %v435_v37 }
  0x2c   :  { %v61_v45 = vadd.f32 %v60_v41, %v59_v38  ;;  %v67_v46 = vadd.f32 %v66_v42, %v65_v39  ;;  %v126_v47 = vadd.f32 %v124_v43, %v91_v14 }
  0x2e   :  { %v62_v48 = vrot.slane %v61_v45, 1  ;;  %v68_v49 = vrot.slane %v67_v46, 1  ;;  %131 = vst.msk [vmem:[#allocation6] sm:$0x3] %vm439_vm0, %v126_v47 }
  0x2f   :  { %300 = shalt.err (!%p297_p12)
}
  0x30   :  { %s301_s18 = scalar_lea.hbm %s510_s6, 32 }
  0x31   :  { %p302_p13 = scmp.ne.s32.totalorder %s510_s6, %s301_s18  ;;  %p305_p0 = scmp.lt.u32.totalorder %s301_s18, %s510_s6 }
  0x33   :  { %p307_p1 = pnand %p305_p0, %p302_p13 }
  0x35   :  { %310 = shalt.err (!%p307_p1)
}
  0x36   :  { %235 = dma.vmem_to_hbm [thread:$0]  %s233_s14, 32, %s510_s6, [#allocation7]   ;;  %v63_v50 = vadd.f32 %v62_v48, %v61_v45  ;;  %v69_v51 = vadd.f32 %v68_v49, %v67_v46  ;;  %v92_v60 = vld [vmem:[%s506_s2] sm:$0x3] }
  0x37   :  { %v136_v2 = vrot.slane %v92_v60, %v418_v12  ;;  %v140_v4 = vrot.slane %v92_v60, %v420_v13  ;;  %v167_v15 = vld [vmem:[%s507_s3] sm:$0x3]  ;;  %s364_s29 = smov [#allocation8]   ;;  %s365_s3 = smov [#allocation5]  }
  0x38   :  { %v71_v52 = vmul.f32 0.14285715, %v63_v50  ;;  %v72_v53 = vmul.f32 0.14285715, %v69_v51  ;;  %v200_v18 = vld [vmem:[%s508_s4] sm:$0x3] }
  0x39   :  { %v205_v21 = vrot.slane %v200_v18, %v418_v12  ;;  %s242_s30 = sshll.u32 %s364_s29, 4  ;;  %v209_v25 = vrot.slane %v200_v18, %v420_v13  ;;  %s222_s8 = sshll.u32 %s365_s3, 4  ;;  %s243_s30 = int_to_ptr.vmem [resolvable:$true] %s242_s30  ;;  %s223_s8 = int_to_ptr.vmem [resolvable:$true] %s222_s8 }
  0x3a   :  { %263 = vrsqrt.f32 %v71_v52  ;;  %vm75_vm1 = vcmp.eq.f32.partialorder %v71_v52, inf  ;;  %v78_v55 = vand.u32 2147483648, %v71_v52  ;;  %vm77_vm2 = vcmp.eq.f32.partialorder %v71_v52, 0.0  ;;  %s311_s4 = scalar_lea.vmem %s243_s30, 32  ;;  %p316_p3 = scmp.lt.s32.totalorder %s243_s30, %s243_s30 }
  0x3b   :  { %265 = vrsqrt.f32 %v72_v53  ;;  %vm82_vm3 = vcmp.eq.f32.partialorder %v72_v53, inf  ;;  %v85_v58 = vand.u32 2147483648, %v72_v53  ;;  %vm84_vm4 = vcmp.eq.f32.partialorder %v72_v53, 0.0  ;;  %p312_p2 = scmp.ne.s32.totalorder %s243_s30, %s311_s4  ;;  %p317_p4 = scmp.lt.s32.totalorder %s311_s4, %s311_s4 }
  0x3d   :  { %p318_p5 = por %p317_p4, %p316_p3 }
  0x3f   :  { %p319_p6 = pnand %p318_p5, %p312_p2 }
  0x44   :  { %v264_v54 = vpop.eup %263 }
  0x45   :  { %v266_v56 = vpop.eup %265  ;;  %v74_v57 = vmul.f32 %v264_v54, %v71_v52 }
  0x46   :  { %v81_v59 = vmul.f32 %v266_v56, %v72_v53 }
  0x47   :  { %v76_v61 = vsel %vm75_vm1, %v71_v52, %v74_v57 }
  0x48   :  { %v79_v62 = vsel %vm77_vm2, %v78_v55, %v76_v61  ;;  %v83_v63 = vsel %vm82_vm3, %v72_v53, %v81_v59 }
  0x49   :  { %v86_v0 = vsel %vm84_vm4, %v85_v58, %v83_v63  ;;  %v87_v1 = vmax.f32 %v79_v62, 1e-05 }
  0x4a   :  { %v88_v3 = vmax.f32 %v86_v0, 1e-05 }
  0x4b   :  { %v89_v5 = vmin.f32 %v87_v1, 10.0 }
  0x4c   :  { %v90_v6 = vmin.f32 %v88_v3, 10.0 }
  0x4d   :  { %v143_v7 = vsub.f32 %v89_v5, %v136_v2 }
  0x4e   :  { %v144_v8 = vsub.f32 %v90_v6, %v140_v4  ;;  %v170_v9 = vcombine.low %v89_v5, %v90_v6 }
  0x4f   :  { %v145_v10 = vmul.f32 0.1, %v143_v7 }
  0x50   :  { %v146_v11 = vmul.f32 0.1, %v144_v8  ;;  %v177_v14 = vrot.slane %v170_v9, %v435_v37 }
  0x52   :  { %v149_v16 = vcombine.low %v145_v10, %v146_v11  ;;  %v184_v17 = vrot.slane %v177_v14, %v435_v37 }
  0x54   :  { %v156_v19 = vrot.slane %v149_v16, %v435_v37  ;;  %v186_v20 = vmul.f32 %v184_v17, %v167_v15 }
  0x56   :  { %v163_v22 = vrot.slane %v156_v19, %v435_v37  ;;  %v191_v23 = vrot.slane %v186_v20, %v418_v12  ;;  %v195_v24 = vrot.slane %v186_v20, %v420_v13 }
  0x58   :  { %v165_v28 = vadd.f32 %v163_v22, %v92_v60  ;;  %v198_v29 = vadd.f32 %v191_v23, %v427_v26  ;;  %v199_v30 = vadd.f32 %v195_v24, %v429_v27 }
  0x5a   :  { %166 = vst.msk [vmem:[#allocation8] sm:$0x3] %vm439_vm0, %v165_v28  ;;  %v212_v31 = vmul.f32 %v205_v21, %v198_v29  ;;  %v213_v32 = vmul.f32 %v209_v25, %v199_v30 }
  0x5b   :  { %322 = shalt.err (!%p319_p6)
}
  0x5c   :  { %s323_s11 = scalar_lea.hbm %s511_s7, 32 }
  0x5d   :  { %p324_p7 = scmp.ne.s32.totalorder %s511_s7, %s323_s11  ;;  %p327_p8 = scmp.lt.u32.totalorder %s323_s11, %s511_s7 }
  0x5f   :  { %p329_p9 = pnand %p327_p8, %p324_p7 }
  0x61   :  { %332 = shalt.err (!%p329_p9)
}
  0x62   :  { %245 = dma.vmem_to_hbm [thread:$0]  %s243_s30, 32, %s511_s7, [#allocation7]   ;;  %214 = vst [vmem:[#allocation5] sm:$0xff] %v212_v31  ;;  %215 = vst [vmem:[#allocation5 + $0x8] sm:$0xff] %v213_v32 }
  0x63   :  { %s333_s16 = scalar_lea.vmem %s223_s8, 256  ;;  %p338_p11 = scmp.lt.s32.totalorder %s223_s8, %s223_s8 }
  0x64   :  { %p334_p10 = scmp.ne.s32.totalorder %s223_s8, %s333_s16  ;;  %p339_p12 = scmp.lt.s32.totalorder %s333_s16, %s333_s16 }
  0x66   :  { %p340_p13 = por %p339_p12, %p338_p11 }
  0x68   :  { %p341_p0 = pnand %p340_p13, %p334_p10 }
  0x6a   :  { %344 = shalt.err (!%p341_p0)
}
  0x6b   :  { %s345_s19 = scalar_lea.hbm %s509_s5, 256 }
  0x6c   :  { %p346_p1 = scmp.ne.s32.totalorder %s509_s5, %s345_s19  ;;  %p349_p2 = scmp.lt.u32.totalorder %s345_s19, %s509_s5 }
  0x6e   :  { %p351_p3 = pnand %p349_p2, %p346_p1 }
  0x70   :  { %354 = shalt.err (!%p351_p3)
}
  0x71   :  { %225 = dma.vmem_to_hbm [thread:$0]  %s223_s8, 256, %s509_s5, [#allocation4]  }
  0x72   :  { %357 = dma.done.wait [#allocation4], 256  }
  0x73   :  { %358 = vsyncadd [#allocation4], 4294967040 }
  0x74   :  { %359 = dma.done.wait [#allocation7], 64  }
  0x75   :  { %360 = vsyncadd [#allocation7], 4294967232 }
  0x76   :  { %255 = vsyncpa [#allocation3], 1 }
  0x77   :  { %256 = vsyncpa [#allocation4], 1 }
  0x78   :  { %257 = vsyncpa [#allocation7], 1 }

</bundles_post_ra>
